<compile_context>
chip_gen: v7x
topology: tpu7x:2x2x1
jax: 0.10.0
libtpu: 0.0.40
codegen_flags: <defaults>
</compile_context>

<pallas_src>
import jax
import jax.numpy as jnp
from jax.experimental import pallas as pl
from jax.experimental.pallas import tpu as pltpu


def _round_up(x: int, m: int) -> int:
    return ((x + m - 1) // m) * m


def _sublane(dtype) -> int:
    # 32-bit -> 8 rows/vreg, 16-bit -> 16, 8-bit -> 32 (sub-32-bit packs sublanes).
    return max(8, 8 * (4 // jnp.dtype(dtype).itemsize))


def _pick_tm(Bp: int, tm_cap: int, sub: int) -> int:
    """Pick a batch tile that is a multiple of `sub`, <= tm_cap, and (when
    possible) divides Bp so no wrapper-side batch padding beyond `sub` fires."""
    tm_cap = max(sub, (tm_cap // sub) * sub)
    TM = min(tm_cap, Bp)
    if Bp % TM != 0:
        floor = max(sub, 128)
        t = TM
        while t >= floor and Bp % t != 0:
            t -= sub
        if t >= floor and Bp % t == 0:
            TM = t
    return TM


# --------------------------------------------------------------------------
# Kernels
# --------------------------------------------------------------------------
def _fused_kernel(x_ref, w_ref, b_ref, o_ref):
    # x_ref: (TM, Fp)  w_ref: (Fp, Cp) [resident]  b_ref: (1, Cp)  o_ref: (TM, Cp)
    acc = jnp.dot(x_ref[...], w_ref[...], preferred_element_type=jnp.float32)
    o_ref[...] = (acc + b_ref[...].astype(jnp.float32)).astype(o_ref.dtype)


def _tiled_kernel_f32out(x_ref, w_ref, b_ref, o_ref):
    # f32 output: accumulate directly into the (resident-across-k) output block.
    k = pl.program_id(2)

    @pl.when(k == 0)
    def _init():
        o_ref[...] = jnp.zeros_like(o_ref)

    o_ref[...] += jnp.dot(x_ref[...], w_ref[...], preferred_element_type=jnp.float32)

    @pl.when(k == pl.num_programs(2) - 1)
    def _bias():
        o_ref[...] += b_ref[...].astype(jnp.float32)


def _tiled_kernel_acc(x_ref, w_ref, b_ref, o_ref, acc_ref):
    # Low-precision output: keep an f32 accumulator scratch.
    k = pl.program_id(2)

    @pl.when(k == 0)
    def _init():
        acc_ref[...] = jnp.zeros_like(acc_ref)

    acc_ref[...] += jnp.dot(x_ref[...], w_ref[...], preferred_element_type=jnp.float32)

    @pl.when(k == pl.num_programs(2) - 1)
    def _finalize():
        o_ref[...] = (acc_ref[...] + b_ref[...].astype(jnp.float32)).astype(o_ref.dtype)


# --------------------------------------------------------------------------
# Wrapper
# --------------------------------------------------------------------------
def linear_head(
    x: jax.Array,
    w: jax.Array,
    b: jax.Array,
    *,
    tm: int = 512,
    compute_dtype=jnp.bfloat16,
    out_dtype=jnp.float32,
    force_tiled: bool = False,
    vmem_budget_bytes: int = 36 * 1024 * 1024,  # conservative: fits v7x 64 MiB/TC
) -> jax.Array:
    """Pallas implementation of the BaseModel output layer (nn.Linear).

    compute_dtype: dtype x/W are streamed in (default bf16; callers should hand
    bf16 features to avoid an extra cast pass). Accumulation is always f32.
    """
    B, F = x.shape
    Fw, C = w.shape
    assert F == Fw and b.shape == (C,)

    if compute_dtype is not None and x.dtype != jnp.dtype(compute_dtype):
        x = x.astype(compute_dtype)
    if compute_dtype is not None and w.dtype != jnp.dtype(compute_dtype):
        w = w.astype(compute_dtype)

    in_item = jnp.dtype(x.dtype).itemsize
    out_item = jnp.dtype(out_dtype).itemsize
    sub = _sublane(x.dtype)

    Bp = _round_up(B, sub)          # minimal batch padding (< sub rows)
    Fp = _round_up(F, 128)
    Cp = _round_up(C, 128)

    def fused_need(tm_: int) -> int:
        return (2 * tm_ * Fp * in_item      # x, double-buffered
                + 2 * Fp * Cp * in_item     # W (resident; 2x safety)
                + 2 * Cp * 4                # bias (kept f32)
                + 2 * tm_ * Cp * out_item)  # output, double-buffered

    use_fused = (not force_tiled) and fused_need(sub) <= vmem_budget_bytes

    if use_fused:
        # ---- K-collapsed path: whole weight resident in VMEM ----
        fit = (vmem_budget_bytes - 2 * Fp * Cp * in_item - 2 * Cp * 4) // (
            2 * (Fp * in_item + Cp * out_item))
        tm_cap = min(tm, max(sub, (int(fit) // sub) * sub))
        TM = _pick_tm(Bp, tm_cap, sub)
        Mp = _round_up(Bp, TM)
        # v7x megacore: make sure the parallel batch axis has >= 2 blocks.
        if Mp // TM == 1 and TM % (2 * sub) == 0:
            TM //= 2

        if (Mp, Fp) != (B, F):
            x = jnp.pad(x, ((0, Mp - B), (0, Fp - F)))
        if (Fp, Cp) != (F, C):
            w = jnp.pad(w, ((0, Fp - F), (0, Cp - C)))
        if Cp != C:
            b = jnp.pad(b, (0, Cp - C))
        b2d = b.reshape(1, Cp)

        grid = (Mp // TM,)
        cost = pl.CostEstimate(
            flops=2 * Mp * Fp * Cp,
            transcendentals=0,
            # x streamed once, W/b loaded once (constant index_map), out written once.
            bytes_accessed=Mp * Fp * in_item + Fp * Cp * in_item + Cp * 4
            + Mp * Cp * out_item,
        )
        vmem_limit = int(min(max(2 * fused_need(TM), 8 << 20), 50 << 20))

        out = pl.pallas_call(
            _fused_kernel,
            out_shape=jax.ShapeDtypeStruct((Mp, Cp), out_dtype),
            grid=grid,
            in_specs=[
                pl.BlockSpec((TM, Fp), lambda i: (i, 0)),
                pl.BlockSpec((Fp, Cp), lambda i: (0, 0)),  # truly VMEM-resident
                pl.BlockSpec((1, Cp), lambda i: (0, 0)),
            ],
            out_specs=pl.BlockSpec((TM, Cp), lambda i: (i, 0)),
            compiler_params=pltpu.CompilerParams(
                dimension_semantics=("parallel",),
                vmem_limit_bytes=vmem_limit,
            ),
            cost_estimate=cost,
        )(x, w, b2d)
        return out[:B, :C]

    # ---- Fallback: K/N-tiled accumulation (heads too large for VMEM) ----
    TN = 256 if Cp % 256 == 0 else 128
    if Fp % 512 == 0:
        TK = 512
    elif Fp % 256 == 0:
        TK = 256
    else:
        TK = 128
    TM = _pick_tm(Bp, min(tm, 256), sub)
    Mp = _round_up(Bp, TM)

    if (Mp, Fp) != (B, F):
        x = jnp.pad(x, ((0, Mp - B), (0, Fp - F)))
    if (Fp, Cp) != (F, C):
        w = jnp.pad(w, ((0, Fp - F), (0, Cp - C)))
    if Cp != C:
        b = jnp.pad(b, (0, Cp - C))
    b2d = b.reshape(1, Cp)

    grid = (Mp // TM, Cp // TN, Fp // TK)

    f32_out = jnp.dtype(out_dtype) == jnp.dtype(jnp.float32)
    kernel = _tiled_kernel_f32out if f32_out else _tiled_kernel_acc
    scratch = [] if f32_out else [pltpu.VMEM((TM, TN), jnp.float32)]

    need = (2 * TM * TK * in_item + 2 * TK * TN * in_item + 2 * TN * 4
            + 2 * TM * TN * out_item + (0 if f32_out else TM * TN * 4))
    vmem_limit = int(min(max(2 * need, 8 << 20), 50 << 20))

    cost = pl.CostEstimate(
        flops=2 * Mp * Fp * Cp,
        transcendentals=0,
        # x re-read per N block; W/b re-read per batch block in this schedule.
        bytes_accessed=Mp * Fp * in_item * grid[1]
        + (Fp * Cp * in_item + Cp * 4) * grid[0]
        + Mp * Cp * out_item,
    )

    out = pl.pallas_call(
        kernel,
        out_shape=jax.ShapeDtypeStruct((Mp, Cp), out_dtype),
        grid=grid,
        in_specs=[
            pl.BlockSpec((TM, TK), lambda i, j, k: (i, k)),
            pl.BlockSpec((TK, TN), lambda i, j, k: (k, j)),
            pl.BlockSpec((1, TN), lambda i, j, k: (0, j)),
        ],
        out_specs=pl.BlockSpec((TM, TN), lambda i, j, k: (i, j)),
        scratch_shapes=scratch,
        compiler_params=pltpu.CompilerParams(
            dimension_semantics=("parallel", "parallel", "arbitrary"),
            vmem_limit_bytes=vmem_limit,
        ),
        cost_estimate=cost,
    )(x, w, b2d)
    return out[:B, :C]


def get_logits(features: jax.Array, w: jax.Array, b: jax.Array,
               *, compute_dtype=jnp.bfloat16) -> jax.Array:
    """Mirrors BaseModel.get_logits_and_labels logits path: stacked per-sample
    classifier-head outputs as a single [N, num_classes] array."""
    return linear_head(features, w, b, compute_dtype=compute_dtype)


if __name__ == "__main__":
    key = jax.random.PRNGKey(0)
    k1x, k1w, k1b, k2x, k2w, k2b, k3x, k3w, k3b = jax.random.split(key, 9)

    # --- 1) Small head, exact f32 path (batch=8, in_features=32, classes=8). ---
    B, F, C = 8, 32, 8
    x = jax.random.normal(k1x, (B, F), dtype=jnp.float32)
    bound = 1.0 / jnp.sqrt(jnp.float32(F))
    w = jax.random.uniform(k1w, (F, C), dtype=jnp.float32, minval=-bound, maxval=bound)
    b = jax.random.uniform(k1b, (C,), dtype=jnp.float32, minval=-bound, maxval=bound)

    logits = linear_head(x, w, b, compute_dtype=jnp.float32)
    jax.block_until_ready(logits)
    ref = x @ w + b[None, :]
    assert logits.shape == (B, C)
    assert jnp.allclose(logits, ref, atol=1e-5, rtol=1e-5)

    # --- 2) Default bf16-streaming, K-collapsed path with ragged class count
    #        (exercises weight residency, dual-TC batch split, N padding). ---
    B2, F2, C2 = 384, 1024, 136
    x2 = jax.random.normal(k2x, (B2, F2), dtype=jnp.float32)
    bound2 = 1.0 / jnp.sqrt(jnp.float32(F2))
    w2 = jax.random.uniform(k2w, (F2, C2), dtype=jnp.float32, minval=-bound2, maxval=bound2)
    b2 = jax.random.uniform(k2b, (C2,), dtype=jnp.float32, minval=-bound2, maxval=bound2)

    logits2 = get_logits(x2, w2, b2)
    jax.block_until_ready(logits2)
    ref2 = (x2.astype(jnp.bfloat16).astype(jnp.float32)
            @ w2.astype(jnp.bfloat16).astype(jnp.float32)) + b2[None, :]
    assert logits2.shape == (B2, C2)
    assert jnp.allclose(logits2, ref2, atol=5e-3, rtol=5e-3)

    # --- 3) Tiled fallback path (forced) to cover very large heads. ---
    B3, F3, C3 = 128, 1536, 256
    x3 = jax.random.normal(k3x, (B3, F3), dtype=jnp.float32)
    bound3 = 1.0 / jnp.sqrt(jnp.float32(F3))
    w3 = jax.random.uniform(k3w, (F3, C3), dtype=jnp.float32, minval=-bound3, maxval=bound3)
    b3 = jax.random.uniform(k3b, (C3,), dtype=jnp.float32, minval=-bound3, maxval=bound3)

    logits3 = linear_head(x3, w3, b3, compute_dtype=jnp.float32, force_tiled=True)
    jax.block_until_ready(logits3)
    ref3 = x3 @ w3 + b3[None, :]
    assert logits3.shape == (B3, C3)
    assert jnp.allclose(logits3, ref3, atol=2e-4, rtol=2e-4)

    print("KERNEL_OK")
</pallas_src>

<mosaic_0001>
module attributes {stable_mosaic.version = 11 : i64} {
  func.func @_fused_kernel(%arg0: i32, %arg1: memref<8x128xf32, #tpu.memory_space<vmem>>, %arg2: memref<128x128xf32, #tpu.memory_space<vmem>>, %arg3: memref<1x128xf32, #tpu.memory_space<vmem>>, %arg4: memref<8x128xf32, #tpu.memory_space<vmem>>) attributes {dimension_semantics = [#tpu.dimension_semantics<parallel>], iteration_bounds = array<i64: 1>, scalar_prefetch = 0 : i64, scratch_operands = 0 : i64, tpu.core_type = #tpu.core_type<tc>, window_params = [{transform_indices = @transform_0, window_bounds = array<i64: 8, 128>}, {pipeline_mode = #tpu.pipeline_mode<synchronous>, transform_indices = @transform_1, window_bounds = array<i64: 128, 128>}, {pipeline_mode = #tpu.pipeline_mode<synchronous>, transform_indices = @transform_2, window_bounds = array<i64: 1, 128>}, {transform_indices = @transform_3, window_bounds = array<i64: 8, 128>}]} {
    %c0 = arith.constant 0 : index
    %c0_0 = arith.constant 0 : index
    %0 = vector.load %arg1[%c0, %c0_0] : memref<8x128xf32, #tpu.memory_space<vmem>>, vector<8x128xf32>
    %c0_1 = arith.constant 0 : index
    %c0_2 = arith.constant 0 : index
    %1 = vector.load %arg2[%c0_1, %c0_2] : memref<128x128xf32, #tpu.memory_space<vmem>>, vector<128x128xf32>
    %cst = arith.constant dense<0.000000e+00> : vector<8x128xf32>
    %2 = tpu.matmul %0, %1, %cst {dimension_numbers = #tpu.dot_dimension_numbers<[1], [0], [0], [1], [0, 0, 1, 1], [], []>} : vector<8x128xf32>, vector<128x128xf32>, vector<8x128xf32> -> vector<8x128xf32>
    %c0_3 = arith.constant 0 : index
    %c0_4 = arith.constant 0 : index
    %3 = vector.load %arg3[%c0_3, %c0_4] : memref<1x128xf32, #tpu.memory_space<vmem>>, vector<1x128xf32>
    %4 = vector.broadcast %3 : vector<1x128xf32> to vector<8x128xf32>
    %5 = arith.addf %2, %4 : vector<8x128xf32>
    %c0_5 = arith.constant 0 : index
    %c0_6 = arith.constant 0 : index
    %6 = vector.load %arg4[%c0_5, %c0_6] : memref<8x128xf32, #tpu.memory_space<vmem>>, vector<8x128xf32>
    tpu.vector_store %arg4[%c0_5, %c0_6], %5 {strides = array<i32>} : memref<8x128xf32, #tpu.memory_space<vmem>>, vector<8x128xf32>,
    return
  }
  func.func @transform_0(%arg0: i32) -> (i32, i32) {
    %c0_i32 = arith.constant 0 : i32
    %c0_i32_0 = arith.constant 0 : i32
    return %arg0, %c0_i32 : i32, i32
  }
  func.func @transform_1(%arg0: i32) -> (i32, i32) {
    %c0_i32 = arith.constant 0 : i32
    %c0_i32_0 = arith.constant 0 : i32
    %c0_i32_1 = arith.constant 0 : i32
    return %c0_i32, %c0_i32_0 : i32, i32
  }
  func.func @transform_2(%arg0: i32) -> (i32, i32) {
    %c0_i32 = arith.constant 0 : i32
    %c0_i32_0 = arith.constant 0 : i32
    %c0_i32_1 = arith.constant 0 : i32
    return %c0_i32, %c0_i32_0 : i32, i32
  }
  func.func @transform_3(%arg0: i32) -> (i32, i32) {
    %c0_i32 = arith.constant 0 : i32
    %c0_i32_0 = arith.constant 0 : i32
    return %arg0, %c0_i32 : i32, i32
  }
}

</mosaic_0001>

<bundles_post_ra>
// kernel: tpu_custom_call.1
= control target key start
LH: loop header
LB: loop body
LE: loop exit
PB: predicated region body
PF: predicated region fallthrough
CT: control target
= control target key end

     0   :  { %8 = vsyncpa [#allocation3], 0  ;;  %s383_s0 = inlined_call_operand.hbm [shape: f32[8,128], index: 0, kind: input, shape index: {}]   ;;  %s384_s1 = inlined_call_operand.hbm [shape: f32[128,128], index: 1, kind: input, shape index: {}]   ;;  %s385_s2 = inlined_call_operand.vmem [shape: f32[1,128], index: 2, kind: input, shape index: {}]   ;;  %s386_s3 = inlined_call_operand.hbm [shape: f32[8,128], index: 3, kind: output, shape index: {}]  }
   0x1   :  { %9 = vsyncpa [#allocation6], 0 }
   0x2   :  { %10 = vsyncpa [#allocation4], 0  ;;  %s309_s12 = smov [#allocation2]   ;;  %s310_s14 = smov [#allocation5]  }
   0x3   :  { %s17_s13 = sshll.u32 %s309_s12, 4  ;;  %s26_s15 = sshll.u32 %s310_s14, 4  ;;  %s18_s13 = int_to_ptr.vmem [resolvable:$true] %s17_s13  ;;  %s337_s15 = int_to_ptr.vmem [resolvable:$true] %s26_s15 }
   0x4   :  { %s237_s18 = scalar_lea.hbm %s383_s0, 128 }
   0x5   :  { %p238_p0 = scmp.ne.s32.totalorder %s383_s0, %s237_s18  ;;  %p241_p1 = scmp.lt.u32.totalorder %s237_s18, %s383_s0 }
   0x7   :  { %p243_p2 = pnand %p241_p1, %p238_p0 }
   0x9   :  { %246 = shalt.err (!%p243_p2)
}
   0xa   :  { %s247_s23 = scalar_lea.vmem %s18_s13, 128  ;;  %p252_p4 = scmp.lt.s32.totalorder %s18_s13, %s18_s13 }
   0xb   :  { %p248_p3 = scmp.ne.s32.totalorder %s18_s13, %s247_s23  ;;  %p253_p5 = scmp.lt.s32.totalorder %s247_s23, %s247_s23 }
   0xd   :  { %p254_p6 = por %p253_p5, %p252_p4 }
   0xf   :  { %p255_p7 = pnand %p254_p6, %p248_p3 }
  0x11   :  { %258 = shalt.err (!%p255_p7)
}
  0x12   :  { %20 = dma.hbm_to_vmem [thread:$0]  %s383_s0, 128, %s18_s13, [#allocation3]  }
  0x13   :  { %s259_s28 = scalar_lea.hbm %s384_s1, 2048 }
  0x14   :  { %p260_p8 = scmp.ne.s32.totalorder %s384_s1, %s259_s28  ;;  %p263_p9 = scmp.lt.u32.totalorder %s259_s28, %s384_s1 }
  0x16   :  { %p265_p10 = pnand %p263_p9, %p260_p8 }
  0x18   :  { %268 = shalt.err (!%p265_p10)
}
  0x19   :  { %s269_s6 = scalar_lea.vmem %s337_s15, 2048  ;;  %p274_p12 = scmp.lt.s32.totalorder %s337_s15, %s337_s15 }
  0x1a   :  { %p270_p11 = scmp.ne.s32.totalorder %s337_s15, %s269_s6  ;;  %p275_p13 = scmp.lt.s32.totalorder %s269_s6, %s269_s6 }
  0x1c   :  { %p276_p0 = por %p275_p13, %p274_p12 }
  0x1e   :  { %p277_p1 = pnand %p276_p0, %p270_p11 }
  0x20   :  { %280 = shalt.err (!%p277_p1)
}
  0x21   :  { %s311_s0 = smov 128   ;;  %s312_s7 = smov 8  }
  0x22   :  { %32 = dma.hbm_to_vmem [thread:$0]  %s384_s1, 2048, %s337_s15, [#allocation6], %s311_s0, %s311_s0, %s312_s7  }
  0x23   :  { %303 = dma.done.wait [#allocation3], 128  }
  0x24   :  { %304 = vsyncadd [#allocation3], 4294967168 }
  0x25   :  { %305 = dma.done.wait [#allocation6], 2048  }
  0x26   :  { %306 = vsyncadd [#allocation6], 4294965248  ;;  %v313_v0 = vmov 0.0|0.0   ;;  %vm314_vm0 = vmmov 0   ;;  %v315_v1 = vmov 0.0   ;;  %v42_v2 = vld [vmem:[#allocation5] sm:$0xff] }
  0x27   :  { %205 = vmatprep.subr.bf16.mxu0 %v313_v0  ;;  %202 = vmatprep.mubr.msk.f32.mxu0 %vm314_vm0, %v315_v1  ;;  %v43_v3 = vld [vmem:[#allocation5 + $0x8] sm:$0xff]  ;;  %v44_v4 = vld [vmem:[#allocation5 + $0x10] sm:$0xff]  ;;  %v45_v6 = vld [vmem:[#allocation5 + $0x18] sm:$0xff]  ;;  %s316_s11 = smov [#allocation7]  }
  0x28   :  { %v206_v5 = vpack.c.bf16 %v43_v3, %v42_v2  ;;  %v209_v7 = vpack.c.bf16 %v45_v6, %v44_v4  ;;  %v46_v8 = vld [vmem:[#allocation5 + $0x20] sm:$0xff]  ;;  %v47_v9 = vld [vmem:[#allocation5 + $0x28] sm:$0xff]  ;;  %v48_v11 = vld [vmem:[#allocation5 + $0x30] sm:$0xff]  ;;  %s142_s12 = sshll.u32 %s316_s11, 4  ;;  %s143_s12 = int_to_ptr.vmem [resolvable:$true] %s142_s12 }
  0x29   :  { %v212_v10 = vpack.c.bf16 %v47_v9, %v46_v8  ;;  %v49_v12 = vld [vmem:[#allocation5 + $0x38] sm:$0xff]  ;;  %v50_v14 = vld [vmem:[#allocation5 + $0x40] sm:$0xff]  ;;  %v51_v15 = vld [vmem:[#allocation5 + $0x48] sm:$0xff]  ;;  %s281_s13 = scalar_lea.vmem %s143_s12, 128  ;;  %p286_p3 = scmp.lt.s32.totalorder %s143_s12, %s143_s12 }
  0x2a   :  { %207 = vmatpush3.bf16.msra.mxu0 %v206_v5  ;;  %v215_v13 = vpack.c.bf16 %v49_v12, %v48_v11  ;;  %v218_v16 = vpack.c.bf16 %v51_v15, %v50_v14  ;;  %v52_v17 = vld [vmem:[#allocation5 + $0x50] sm:$0xff]  ;;  %v53_v18 = vld [vmem:[#allocation5 + $0x58] sm:$0xff]  ;;  %v54_v20 = vld [vmem:[#allocation5 + $0x60] sm:$0xff]  ;;  %p282_p2 = scmp.ne.s32.totalorder %s143_s12, %s281_s13  ;;  %p287_p4 = scmp.lt.s32.totalorder %s281_s13, %s281_s13 }
  0x2b   :  { %208 = vmatprep.subr.bf16.mxu0 %v313_v0  ;;  %v221_v19 = vpack.c.bf16 %v53_v18, %v52_v17  ;;  %v55_v21 = vld [vmem:[#allocation5 + $0x68] sm:$0xff]  ;;  %v56_v23 = vld [vmem:[#allocation5 + $0x70] sm:$0xff]  ;;  %v57_v24 = vld [vmem:[#allocation5 + $0x78] sm:$0xff] }
  0x2c   :  { %v224_v22 = vpack.c.bf16 %v55_v21, %v54_v20  ;;  %v227_v25 = vpack.c.bf16 %v57_v24, %v56_v23  ;;  %v41_v26 = vld [vmem:[#allocation2] sm:$0xff]  ;;  %p288_p5 = por %p287_p4, %p286_p3 }
  0x2d   :  { %v152_v27 = vld [vmem:[%s385_s2] ss:$0 sm:$0xff] }
  0x2e   :  { %210 = vmatpush3.bf16.msra.mxu0 %v209_v7  ;;  %p289_p6 = pnand %p288_p5, %p282_p2 }
  0x2f   :  { %211 = vmatprep.subr.bf16.mxu0 %v313_v0 }
  0x32   :  { %213 = vmatpush3.bf16.msra.mxu0 %v212_v10 }
  0x33   :  { %214 = vmatprep.subr.bf16.mxu0 %v313_v0 }
  0x36   :  { %216 = vmatpush3.bf16.msra.mxu0 %v215_v13 }
  0x37   :  { %217 = vmatprep.subr.bf16.mxu0 %v313_v0 }
  0x3a   :  { %219 = vmatpush3.bf16.msra.mxu0 %v218_v16 }
  0x3b   :  { %220 = vmatprep.subr.bf16.mxu0 %v313_v0 }
  0x3e   :  { %222 = vmatpush3.bf16.msra.mxu0 %v221_v19 }
  0x3f   :  { %223 = vmatprep.subr.bf16.mxu0 %v313_v0 }
  0x42   :  { %225 = vmatpush3.bf16.msra.mxu0 %v224_v22 }
  0x43   :  { %226 = vmatprep.subr.bf16.mxu0 %v313_v0 }
  0x46   :  { %228 = vmatpush3.bf16.msra.mxu0 %v227_v25 }
  0x49   :  { %203 = vmatmul.mubr.f32.vlgmr.msra.gmra.mrb[0].mxu0 %v41_v26 }
 0x11c   :  { %v131_v28 = vpop.f32.mrb[0].mxu0 }
 0x11d   :  { %v132_v29 = vadd.f32 %v152_v27, %v131_v28  ;;  %v204_v30 = vpop.f32.mrb[1].mxu0 }
 0x11f   :  { %135 = vst [vmem:[#allocation7] sm:$0xff] %v132_v29 }
 0x120   :  { %292 = shalt.err (!%p289_p6)
}
 0x121   :  { %s293_s16 = scalar_lea.hbm %s386_s3, 128 }
 0x122   :  { %p294_p7 = scmp.ne.s32.totalorder %s386_s3, %s293_s16  ;;  %p297_p8 = scmp.lt.u32.totalorder %s293_s16, %s386_s3 }
 0x124   :  { %p299_p9 = pnand %p297_p8, %p294_p7 }
 0x126   :  { %302 = shalt.err (!%p299_p9)
}
 0x127   :  { %145 = dma.vmem_to_hbm [thread:$0]  %s143_s12, 128, %s386_s3, [#allocation4]  }
 0x128   :  { %307 = dma.done.wait [#allocation4], 128  }
 0x129   :  { %308 = vsyncadd [#allocation4], 4294967168 }
 0x12a   :  { %149 = vsyncpa [#allocation3], 1 }
 0x12b   :  { %150 = vsyncpa [#allocation6], 1 }
 0x12c   :  { %151 = vsyncpa [#allocation4], 1 }

</bundles_post_ra>
